<compile_context>
chip_gen: v5e
topology: v5e:2x2
jax: 0.10.0
libtpu: 0.0.40
codegen_flags: <defaults>
</compile_context>

<pallas_src>
import functools

import jax
import jax.numpy as jnp
import numpy as np
from jax.experimental import pallas as pl
from jax.experimental.pallas import tpu as pltpu


# ------------------------------- kernel ------------------------------------ #

def ffn_kernel(x_ref, w1_ref, b1_ref, w2_ref, b2_ref, o_ref, *, compute_dtype):
    """One (C, tile_n) pixel tile of one batch element.

    x_ref : (1, C, tile_n)   input pixels (channels on sublanes, pixels on lanes)
    w1_ref: (4C, C)          conv1 weight with BN1 folded in (compute_dtype)
    b1_ref: (4C, 1)          conv1 bias  with BN1 folded in (f32)
    w2_ref: (C, 4C)          conv2 weight with BN2 folded in (compute_dtype)
    b2_ref: (C, 1)           conv2 bias  with BN2 folded in (f32)
    o_ref : (1, C, tile_n)
    """
    x = x_ref[0].astype(compute_dtype)                     # (C, tile_n)

    # conv1x1 (C -> 4C) + BN1 (folded) + ReLU6 (f32 accumulate, f32 elementwise)
    h = jnp.dot(w1_ref[...], x,
                preferred_element_type=jnp.float32) + b1_ref[...]     # (4C, tile_n)
    h = jnp.clip(h, 0.0, 6.0)

    # conv1x1 (4C -> C) + BN2 (folded) + outer ReLU6
    y = jnp.dot(w2_ref[...], h.astype(compute_dtype),
                preferred_element_type=jnp.float32) + b2_ref[...]     # (C, tile_n)
    o_ref[...] = jnp.clip(y, 0.0, 6.0).astype(o_ref.dtype)[None]


# ------------------------------- wrapper ------------------------------------ #

def _choose_tile(n):
    # Largest lane-dense tile that divides N (per-step overhead amortization);
    # even at tile_n=2048 with C=32 the working set is well under the VMEM limit.
    for t in (2048, 1024, 512, 256, 128):
        if n % t == 0:
            return t
    return n  # fall back to the full row (block dim equals array dim -> legal)


def ffn_forward(x, folded, *, compute_dtype=jnp.float32):
    """x: (B, C, H, W) float32. folded: BN-folded conv params. Returns (B, C, H, W)."""
    B, C, H, W = x.shape
    N = H * W
    H4 = folded["w1"].shape[0]
    tn = _choose_tile(N)
    grid = (B, N // tn)

    x3 = x.reshape(B, C, N)  # free: NCHW already has (H*W) contiguous per channel

    # One-time cast of the (small) weight matrices to the MXU operand dtype;
    # avoids re-casting them on every grid step inside the kernel.
    w1 = folded["w1"].astype(compute_dtype)
    w2 = folded["w2"].astype(compute_dtype)

    def const2(shape):
        return pl.BlockSpec(shape, lambda b, j: (0, 0))

    out3 = pl.pallas_call(
        functools.partial(ffn_kernel, compute_dtype=compute_dtype),
        grid=grid,
        in_specs=[
            pl.BlockSpec((1, C, tn), lambda b, j: (b, 0, j)),
            const2((H4, C)),
            const2((H4, 1)),
            const2((C, H4)),
            const2((C, 1)),
        ],
        out_specs=pl.BlockSpec((1, C, tn), lambda b, j: (b, 0, j)),
        out_shape=jax.ShapeDtypeStruct((B, C, N), jnp.float32),
        input_output_aliases={0: 0},
        compiler_params=pltpu.CompilerParams(
            dimension_semantics=("parallel", "parallel")),
    )(x3, w1, folded["b1"], w2, folded["b2"])

    return out3.reshape(B, C, H, W)


# --------------------------- parameter helpers ------------------------------ #

def make_params(key, dim):
    """Raw parameters mirroring the PyTorch module (Conv2d 1x1 + BatchNorm2d)."""
    h4 = 4 * dim
    ks = jax.random.split(key, 6)

    def bn_params(k, c):
        k1, k2, k3, k4 = jax.random.split(k, 4)
        gamma = 1.0 + 0.1 * jax.random.normal(k1, (c,), jnp.float32)
        beta = 0.1 * jax.random.normal(k2, (c,), jnp.float32)
        mean = 0.1 * jax.random.normal(k3, (c,), jnp.float32)
        var = 1.0 + 0.1 * jax.random.uniform(k4, (c,), jnp.float32)
        return gamma, beta, mean, var

    p = {}
    p["w1"] = 0.05 * jax.random.normal(ks[0], (h4, dim), jnp.float32)   # (out, in)
    p["b1"] = 0.05 * jax.random.normal(ks[1], (h4,), jnp.float32)
    p["w2"] = 0.05 * jax.random.normal(ks[2], (dim, h4), jnp.float32)
    p["b2"] = 0.05 * jax.random.normal(ks[3], (dim,), jnp.float32)
    p["bn1_g"], p["bn1_b"], p["bn1_m"], p["bn1_v"] = bn_params(ks[4], h4)
    p["bn2_g"], p["bn2_b"], p["bn2_m"], p["bn2_v"] = bn_params(ks[5], dim)
    return p


def fold_bn(p, eps=1e-5):
    """Fold eval-mode BatchNorm into the preceding 1x1 conv (one-time transform)."""
    s1 = p["bn1_g"] / jnp.sqrt(p["bn1_v"] + eps)
    t1 = p["bn1_b"] - p["bn1_m"] * s1
    s2 = p["bn2_g"] / jnp.sqrt(p["bn2_v"] + eps)
    t2 = p["bn2_b"] - p["bn2_m"] * s2
    return {
        "w1": s1[:, None] * p["w1"],
        "b1": (s1 * p["b1"] + t1)[:, None],     # (4C, 1) -> broadcasts over lanes
        "w2": s2[:, None] * p["w2"],
        "b2": (s2 * p["b2"] + t2)[:, None],     # (C, 1)
    }


# --------------------------- pure-JAX reference ----------------------------- #

def ffn_reference(x, p, eps=1e-5):
    def bn(h, g, b, m, v):
        s = g / jnp.sqrt(v + eps)
        t = b - m * s
        return h * s[None, :, None, None] + t[None, :, None, None]

    h = jnp.einsum("oc,bchw->bohw", p["w1"], x) + p["b1"][None, :, None, None]
    h = jnp.clip(bn(h, p["bn1_g"], p["bn1_b"], p["bn1_m"], p["bn1_v"]), 0.0, 6.0)
    y = jnp.einsum("oc,bchw->bohw", p["w2"], h) + p["b2"][None, :, None, None]
    y = jnp.clip(bn(y, p["bn2_g"], p["bn2_b"], p["bn2_m"], p["bn2_v"]), 0.0, 6.0)
    return y


# --------------------------------- main ------------------------------------- #

if __name__ == "__main__":
    B, C, H, W = 2, 32, 16, 16          # dim=32 -> hidden=128, N=256

    key = jax.random.PRNGKey(0)
    kx, kp = jax.random.split(key)
    x = jax.random.normal(kx, (B, C, H, W), jnp.float32)
    params = make_params(kp, C)
    folded = fold_bn(params)

    y_ref = ffn_reference(x, params)

    # f32 path (exact semantics)
    fwd_f32 = jax.jit(functools.partial(ffn_forward, compute_dtype=jnp.float32))
    y = jax.block_until_ready(fwd_f32(x, folded))
    np.testing.assert_allclose(np.asarray(y), np.asarray(y_ref), rtol=2e-5, atol=2e-5)

    # bf16 MXU operands, f32 accumulation (the fast path on v5e/v6e/v7x MXUs)
    fwd_bf16 = jax.jit(functools.partial(ffn_forward, compute_dtype=jnp.bfloat16))
    y16 = jax.block_until_ready(fwd_bf16(x, folded))
    np.testing.assert_allclose(np.asarray(y16), np.asarray(y_ref), rtol=5e-2, atol=5e-2)

    assert y.shape == (B, C, H, W)
    print("KERNEL_OK")
</pallas_src>

<mosaic_0001>
module attributes {stable_mosaic.version = 11 : i64} {
  func.func @ffn_kernel(%arg0: i32, %arg1: i32, %arg2: memref<1x32x256xf32, #tpu.memory_space<vmem>>, %arg3: memref<128x32xf32, #tpu.memory_space<vmem>>, %arg4: memref<128x1xf32, #tpu.memory_space<vmem>>, %arg5: memref<32x128xf32, #tpu.memory_space<vmem>>, %arg6: memref<32x1xf32, #tpu.memory_space<vmem>>, %arg7: memref<1x32x256xf32, #tpu.memory_space<vmem>>) attributes {dimension_semantics = [#tpu.dimension_semantics<parallel>, #tpu.dimension_semantics<parallel>], iteration_bounds = array<i64: 2, 1>, scalar_prefetch = 0 : i64, scratch_operands = 0 : i64, tpu.core_type = #tpu.core_type<tc>, window_params = [{transform_indices = @transform_0, window_bounds = array<i64: 1, 32, 256>}, {pipeline_mode = #tpu.pipeline_mode<synchronous>, transform_indices = @transform_1, window_bounds = array<i64: 128, 32>}, {pipeline_mode = #tpu.pipeline_mode<synchronous>, transform_indices = @transform_2, window_bounds = array<i64: 128, 1>}, {pipeline_mode = #tpu.pipeline_mode<synchronous>, transform_indices = @transform_3, window_bounds = array<i64: 32, 128>}, {pipeline_mode = #tpu.pipeline_mode<synchronous>, transform_indices = @transform_4, window_bounds = array<i64: 32, 1>}, {transform_indices = @transform_5, window_bounds = array<i64: 1, 32, 256>}]} {
    %c0 = arith.constant 0 : index
    %c0_0 = arith.constant 0 : index
    %c0_1 = arith.constant 0 : index
    %0 = vector.load %arg2[%c0, %c0_0, %c0_1] : memref<1x32x256xf32, #tpu.memory_space<vmem>>, vector<1x32x256xf32>
    %1 = vector.shape_cast %0 : vector<1x32x256xf32> to vector<32x256xf32>
    %c0_2 = arith.constant 0 : index
    %c0_3 = arith.constant 0 : index
    %2 = vector.load %arg3[%c0_2, %c0_3] : memref<128x32xf32, #tpu.memory_space<vmem>>, vector<128x32xf32>
    %cst = arith.constant dense<0.000000e+00> : vector<128x256xf32>
    %3 = tpu.matmul %2, %1, %cst {dimension_numbers = #tpu.dot_dimension_numbers<[1], [0], [0], [1], [0, 0, 1, 1], [], []>} : vector<128x32xf32>, vector<32x256xf32>, vector<128x256xf32> -> vector<128x256xf32>
    %c0_4 = arith.constant 0 : index
    %c0_5 = arith.constant 0 : index
    %4 = vector.load %arg4[%c0_4, %c0_5] : memref<128x1xf32, #tpu.memory_space<vmem>>, vector<128x1xf32>
    %5 = vector.broadcast %4 : vector<128x1xf32> to vector<128x256xf32>
    %6 = arith.addf %3, %5 : vector<128x256xf32>
    %cst_6 = arith.constant 0.000000e+00 : f32
    %cst_7 = arith.constant 6.000000e+00 : f32
    %7 = vector.broadcast %cst_6 : f32 to vector<128x256xf32>
    %8 = arith.maximumf %7, %6 : vector<128x256xf32>
    %9 = vector.broadcast %cst_7 : f32 to vector<128x256xf32>
    %10 = arith.minimumf %9, %8 : vector<128x256xf32>
    %c0_8 = arith.constant 0 : index
    %c0_9 = arith.constant 0 : index
    %11 = vector.load %arg5[%c0_8, %c0_9] : memref<32x128xf32, #tpu.memory_space<vmem>>, vector<32x128xf32>
    %cst_10 = arith.constant dense<0.000000e+00> : vector<32x256xf32>
    %12 = tpu.matmul %11, %10, %cst_10 {dimension_numbers = #tpu.dot_dimension_numbers<[1], [0], [0], [1], [0, 0, 1, 1], [], []>} : vector<32x128xf32>, vector<128x256xf32>, vector<32x256xf32> -> vector<32x256xf32>
    %c0_11 = arith.constant 0 : index
    %c0_12 = arith.constant 0 : index
    %13 = vector.load %arg6[%c0_11, %c0_12] : memref<32x1xf32, #tpu.memory_space<vmem>>, vector<32x1xf32>
    %14 = vector.broadcast %13 : vector<32x1xf32> to vector<32x256xf32>
    %15 = arith.addf %12, %14 : vector<32x256xf32>
    %cst_13 = arith.constant 0.000000e+00 : f32
    %cst_14 = arith.constant 6.000000e+00 : f32
    %16 = vector.broadcast %cst_13 : f32 to vector<32x256xf32>
    %17 = arith.maximumf %16, %15 : vector<32x256xf32>
    %18 = vector.broadcast %cst_14 : f32 to vector<32x256xf32>
    %19 = arith.minimumf %18, %17 : vector<32x256xf32>
    %20 = vector.shape_cast %19 : vector<32x256xf32> to vector<1x32x256xf32>
    %c0_15 = arith.constant 0 : index
    %c0_16 = arith.constant 0 : index
    %c0_17 = arith.constant 0 : index
    %21 = vector.load %arg7[%c0_15, %c0_16, %c0_17] : memref<1x32x256xf32, #tpu.memory_space<vmem>>, vector<1x32x256xf32>
    tpu.vector_store %arg7[%c0_15, %c0_16, %c0_17], %20 {strides = array<i32>} : memref<1x32x256xf32, #tpu.memory_space<vmem>>, vector<1x32x256xf32>,
    return
  }
  func.func @transform_0(%arg0: i32, %arg1: i32) -> (i32, i32, i32) {
    %c0_i32 = arith.constant 0 : i32
    %c0_i32_0 = arith.constant 0 : i32
    return %arg0, %c0_i32, %arg1 : i32, i32, i32
  }
  func.func @transform_1(%arg0: i32, %arg1: i32) -> (i32, i32) {
    %c0_i32 = arith.constant 0 : i32
    %c0_i32_0 = arith.constant 0 : i32
    %c0_i32_1 = arith.constant 0 : i32
    return %c0_i32, %c0_i32_0 : i32, i32
  }
  func.func @transform_2(%arg0: i32, %arg1: i32) -> (i32, i32) {
    %c0_i32 = arith.constant 0 : i32
    %c0_i32_0 = arith.constant 0 : i32
    %c0_i32_1 = arith.constant 0 : i32
    return %c0_i32, %c0_i32_0 : i32, i32
  }
  func.func @transform_3(%arg0: i32, %arg1: i32) -> (i32, i32) {
    %c0_i32 = arith.constant 0 : i32
    %c0_i32_0 = arith.constant 0 : i32
    %c0_i32_1 = arith.constant 0 : i32
    return %c0_i32, %c0_i32_0 : i32, i32
  }
  func.func @transform_4(%arg0: i32, %arg1: i32) -> (i32, i32) {
    %c0_i32 = arith.constant 0 : i32
    %c0_i32_0 = arith.constant 0 : i32
    %c0_i32_1 = arith.constant 0 : i32
    return %c0_i32, %c0_i32_0 : i32, i32
  }
  func.func @transform_5(%arg0: i32, %arg1: i32) -> (i32, i32, i32) {
    %c0_i32 = arith.constant 0 : i32
    %c0_i32_0 = arith.constant 0 : i32
    return %arg0, %c0_i32, %arg1 : i32, i32, i32
  }
}

</mosaic_0001>

<bundles_post_ra>
// kernel: ffn_forward.1
= control target key start
LH: loop header
LB: loop body
LE: loop exit
PB: predicated region body
PF: predicated region fallthrough
CT: control target
= control target key end

     0   :  { %s960_s18 = smov 0   ;;  %s962_s19 = smov 0   ;;  %s1205_s0 = inlined_call_operand.vmem [shape: f32[2,32,256], index: 0, kind: input, shape index: {}, may-alias: {0,5}]   ;;  %s1206_s1 = inlined_call_operand.vmem [shape: f32[128,32], index: 1, kind: input, shape index: {}]   ;;  %s1207_s2 = inlined_call_operand.vmem [shape: f32[128,1], index: 2, kind: input, shape index: {}]   ;;  %s1208_s3 = inlined_call_operand.vmem [shape: f32[32,128], index: 3, kind: input, shape index: {}]   ;;  %s1209_s4 = inlined_call_operand.vmem [shape: f32[32,1], index: 4, kind: input, shape index: {}]   ;;  %s1210_s5 = inlined_call_operand.vmem [shape: f32[2,32,256], index: 5, kind: output, shape index: {}, may-alias: {0,5}]  }
   0x1   :  { %s964_s20 = smov 0  }
   0x2 LB: > { %s27_s21 = sadd.s32 1, %s923_s19  ;;  %p828_p0 = scmp.ge.s32.totalorder %s927_s20, 1  ;;  %s927_s20 = sphi %s964_s20, %s15_s20   ;;  %s923_s19 = sphi %s962_s19, %s1212_s19   ;;  %s919_s18 = sphi %s960_s18, %s1211_s18  }
   0x3   : > { %p29_p1 = scmp.ge.s32.totalorder %s27_s21, 2  ;;  %p208_p2 = scmp.lt.s32.totalorder %s927_s20, 3 }
   0x5   : > { %s1214_s21 = smov (%p29_p1, %s27_s21), 0  ;;  %p209_p3 = pnand %p828_p0, %p208_p2 }
   0x6   : > { %p245_p4 = scmp.lt.s32.totalorder (!%p209_p3), %s919_s18, 1 }
   0x7   : > { %212 = sbr.rel (%p209_p3) target bundleno = 421 (0x1a5), region = 40 }
   0xc   : > { %v303_v0 = vld [vmem:[%s1207_s2 + $0x78] sm:$0xff]  ;;  %v301_v1 = vld [vmem:[%s1207_s2 + $0x68] sm:$0xff]  ;;  %v929_v2 = vmov 0   ;;  %s1216_s18 = smov (!%p245_p4, %s919_s18), 1  ;;  %v302_v8 = vld [vmem:[%s1207_s2 + $0x70] sm:$0xff]  ;;  %vm384_vm0 = vcmask 261120  }
   0xd   : > { %902 = vset.pattern.permute.xlu0 %v929_v2  ;;  %903 = vset.pattern.permute.xlu1 %v929_v2  ;;  %v299_v3 = vld [vmem:[%s1207_s2 + $0x58] sm:$0xff]  ;;  %s867_s28 = sshll.u32 %s1216_s18, 6  ;;  %v272_v13 = vld [vmem:[%s1206_s1] sm:$0xff]  ;;  %v1007_v15 = vld [vmem:[%s1206_s1 + $0x50] sm:$0xff] }
   0xe   : > { %381 = vperm.xlu0 %902, %v303_v0   ;;  %371 = vperm.xlu1 %903, %v301_v1   ;;  %s252_s6 = scalar_lea.vmem %s1205_s0, %s867_s28  ;;  %v283_v14 = vld [vmem:[%s1206_s1 + $0x58] sm:$0xff]  ;;  %v300_v16 = vld [vmem:[%s1207_s2 + $0x60] sm:$0xff]  ;;  %v298_v17 = vld [vmem:[%s1207_s2 + $0x50] sm:$0xff]  ;;  %s1186_s27 = scalar_lea.vmem %s1210_s5, %s867_s28 }
   0xf   : > { %904 = vset.pattern.permute.xlu2 %v929_v2  ;;  %v270_v4 = vld [vmem:[%s252_s6 + $0x30] sm:$0xff]  ;;  %v271_v5 = vld [vmem:[%s252_s6 + $0x38] sm:$0xff]  ;;  %v268_v6 = vld [vmem:[%s252_s6 + $0x20] sm:$0xff] }
  0x10   : > { %361 = vperm.xlu2 %904, %v299_v3   ;;  %445 = vmatpush.msra.mxu0 %v270_v4  ;;  %v269_v7 = vld [vmem:[%s252_s6 + $0x28] sm:$0xff]  ;;  %v266_v9 = vld [vmem:[%s252_s6 + $0x10] sm:$0xff]  ;;  %v267_v10 = vld [vmem:[%s252_s6 + $0x18] sm:$0xff] }
  0x11   : > { %869 = vmatpush.msra.mxu2 %v270_v4  ;;  %510 = vmatpush.msra.mxu1 %v271_v5  ;;  %v264_v11 = vld [vmem:[%s252_s6] sm:$0xff]  ;;  %v265_v12 = vld [vmem:[%s252_s6 + $0x8] sm:$0xff]  ;;  %v295_v22 = vld [vmem:[%s1207_s2 + $0x38] sm:$0xff] }
  0x12   : > { %873 = vmatpush.msra.mxu3 %v271_v5  ;;  %446 = vmatpush.msra.mxu0 %v268_v6  ;;  %v297_v18 = vld [vmem:[%s1207_s2 + $0x48] sm:$0xff]  ;;  %v284_v20 = vld [vmem:[%s1206_s1 + $0x60] sm:$0xff]  ;;  %v294_v23 = vld [vmem:[%s1207_s2 + $0x30] sm:$0xff] }
  0x13   : > { %870 = vmatpush.msra.mxu2 %v268_v6  ;;  %511 = vmatpush.msra.mxu1 %v269_v7  ;;  %v273_v19 = vld [vmem:[%s1206_s1 + $0x8] sm:$0xff]  ;;  %v296_v21 = vld [vmem:[%s1207_s2 + $0x40] sm:$0xff]  ;;  %v274_v24 = vld [vmem:[%s1206_s1 + $0x10] sm:$0xff] }
  0x14   : > { %874 = vmatpush.msra.mxu3 %v269_v7  ;;  %447 = vmatpush.msra.mxu0 %v266_v9  ;;  %v285_v25 = vld [vmem:[%s1206_s1 + $0x68] sm:$0xff]  ;;  %v292_v27 = vld [vmem:[%s1207_s2 + $0x20] sm:$0xff]  ;;  %v291_v28 = vld [vmem:[%s1207_s2 + $0x18] sm:$0xff] }
  0x15   : > { %871 = vmatpush.msra.mxu2 %v266_v9  ;;  %512 = vmatpush.msra.mxu1 %v267_v10  ;;  %v293_v26 = vld [vmem:[%s1207_s2 + $0x28] sm:$0xff]  ;;  %v275_v29 = vld [vmem:[%s1206_s1 + $0x18] sm:$0xff]  ;;  %v286_v30 = vld [vmem:[%s1206_s1 + $0x70] sm:$0xff] }
  0x16   : > { %376 = vperm.xlu0 %902, %v302_v8   ;;  %875 = vmatpush.msra.mxu3 %v267_v10  ;;  %v290_v31 = vld [vmem:[%s1207_s2 + $0x10] sm:$0xff]  ;;  %v289_v32 = vld [vmem:[%s1207_s2 + $0x8] sm:$0xff]  ;;  %v288_v33 = vld [vmem:[%s1207_s2] sm:$0xff] }
  0x17   : > { %448 = vmatpush.msra.mxu0 %v264_v11  ;;  %872 = vmatpush.msra.mxu2 %v264_v11  ;;  %v276_v34 = vld [vmem:[%s1206_s1 + $0x20] sm:$0xff]  ;;  %v287_v35 = vld [vmem:[%s1206_s1 + $0x78] sm:$0xff]  ;;  %v633_v37 = vld [vmem:[%s1209_s4 + $0x10] sm:$0xff] }
  0x18   : > { %513 = vmatpush.msra.mxu1 %v265_v12  ;;  %876 = vmatpush.msra.mxu3 %v265_v12  ;;  %v631_v36 = vld [vmem:[%s1209_s4] sm:$0xff]  ;;  %v277_v38 = vld [vmem:[%s1206_s1 + $0x28] sm:$0xff]  ;;  %v634_v39 = vld [vmem:[%s1209_s4 + $0x18] sm:$0xff] }
  0x19   : > { %833 = vmatmul.msk.f32.vlgmr.msra.gmra.mxu0 %vm384_vm0, %v272_v13  ;;  %844 = vmatmul.msk.f32.vlgmr.msra.gmra.mxu2 %vm384_vm0, %v283_v14  ;;  %v278_v40 = vld [vmem:[%s1206_s1 + $0x30] sm:$0xff]  ;;  %v632_v41 = vld [vmem:[%s1209_s4 + $0x8] sm:$0xff]  ;;  %v279_v42 = vld [vmem:[%s1206_s1 + $0x38] sm:$0xff] }
  0x1a   : > { %849 = vmatmul.msk.f32.vlgmr.msra.gmra.mxu1 %vm384_vm0, %v272_v13  ;;  %859 = vmatmul.msk.f32.vlgmr.msra.gmra.mxu3 %vm384_vm0, %v1007_v15  ;;  %v280_v43 = vld [vmem:[%s1206_s1 + $0x40] sm:$0xff]  ;;  %v281_v44 = vld [vmem:[%s1206_s1 + $0x48] sm:$0xff] }
  0x1b   : > { %366 = vperm.xlu1 %903, %v300_v16   ;;  %356 = vperm.xlu2 %904, %v298_v17  }
  0x1e   : > { %351 = vperm.xlu0 %902, %v297_v18  }
  0x21   : > { %834 = vmatmul.msk.f32.gmra.mxu0 %vm384_vm0, %v273_v19  ;;  %845 = vmatmul.msk.f32.gmra.mxu2 %vm384_vm0, %v284_v20 }
  0x22   : > { %850 = vmatmul.msk.f32.gmra.mxu1 %vm384_vm0, %v273_v19  ;;  %860 = vmatmul.msk.f32.gmra.mxu3 %vm384_vm0, %v283_v14 }
  0x23   : > { %346 = vperm.xlu1 %903, %v296_v21   ;;  %341 = vperm.xlu2 %904, %v295_v22  }
  0x26   : > { %336 = vperm.xlu0 %902, %v294_v23  }
  0x29   : > { %835 = vmatmul.msk.f32.gmra.mxu0 %vm384_vm0, %v274_v24  ;;  %846 = vmatmul.msk.f32.gmra.mxu2 %vm384_vm0, %v285_v25 }
  0x2a   : > { %851 = vmatmul.msk.f32.gmra.mxu1 %vm384_vm0, %v274_v24  ;;  %861 = vmatmul.msk.f32.gmra.mxu3 %vm384_vm0, %v284_v20 }
  0x2b   : > { %331 = vperm.xlu1 %903, %v293_v26   ;;  %326 = vperm.xlu2 %904, %v292_v27  }
  0x2e   : > { %321 = vperm.xlu0 %902, %v291_v28  }
  0x31   : > { %836 = vmatmul.msk.f32.gmra.mxu0 %vm384_vm0, %v275_v29  ;;  %847 = vmatmul.msk.f32.gmra.mxu2 %vm384_vm0, %v286_v30 }
  0x32   : > { %852 = vmatmul.msk.f32.gmra.mxu1 %vm384_vm0, %v275_v29  ;;  %862 = vmatmul.msk.f32.gmra.mxu3 %vm384_vm0, %v285_v25 }
  0x33   : > { %316 = vperm.xlu1 %903, %v290_v31   ;;  %311 = vperm.xlu2 %904, %v289_v32  }
  0x36   : > { %306 = vperm.xlu0 %902, %v288_v33  }
  0x39   : > { %837 = vmatmul.msk.f32.gmra.mxu0 %vm384_vm0, %v276_v34  ;;  %848 = vmatmul.msk.f32.gmra.mxu2 %vm384_vm0, %v287_v35 }
  0x3a   : > { %853 = vmatmul.msk.f32.gmra.mxu1 %vm384_vm0, %v276_v34  ;;  %863 = vmatmul.msk.f32.gmra.mxu3 %vm384_vm0, %v286_v30 }
  0x3b   : > { %637 = vperm.xlu1 %903, %v631_v36   ;;  %642 = vperm.xlu2 %904, %v632_v41  }
  0x3e   : > { %647 = vperm.xlu0 %902, %v633_v37  }
  0x41   : > { %838 = vmatmul.msk.f32.gmra.mxu0 %vm384_vm0, %v277_v38 }
  0x42   : > { %854 = vmatmul.msk.f32.gmra.mxu1 %vm384_vm0, %v277_v38  ;;  %864 = vmatmul.msk.f32.gmra.mxu3 %vm384_vm0, %v287_v35 }
  0x43   : > { %652 = vperm.xlu1 %903, %v634_v39  }
  0x49   : > { %839 = vmatmul.msk.f32.gmra.mxu0 %vm384_vm0, %v278_v40 }
  0x4a   : > { %855 = vmatmul.msk.f32.gmra.mxu1 %vm384_vm0, %v278_v40 }
  0x51   : > { %840 = vmatmul.msk.f32.gmra.mxu0 %vm384_vm0, %v279_v42 }
  0x52   : > { %856 = vmatmul.msk.f32.gmra.mxu1 %vm384_vm0, %v279_v42 }
  0x59   : > { %841 = vmatmul.msk.f32.gmra.mxu0 %vm384_vm0, %v280_v43 }
  0x5a   : > { %857 = vmatmul.msk.f32.gmra.mxu1 %vm384_vm0, %v280_v43 }
  0x61   : > { %842 = vmatmul.msk.f32.gmra.mxu0 %vm384_vm0, %v281_v44 }
  0x62   : > { %858 = vmatmul.msk.f32.gmra.mxu1 %vm384_vm0, %v281_v44 }
  0x69   : > { %843 = vmatmul.msk.f32.gmra.mxu0 %vm384_vm0, %v1007_v15 }
  0x6a   : > { %v362_v14 = vpop.permute.xlu2 %361 }
  0x75   : > { %v357_v36 = vpop.permute.xlu2 %356 }
  0x80   : > { %v382_v58 = vpop.permute.xlu0 %381  ;;  %v372_v60 = vpop.permute.xlu1 %371 }
  0x88   : > { %v377_v1 = vpop.permute.xlu0 %376 }
  0x8d   : > { %v367_v4 = vpop.permute.xlu1 %366 }
  0x90   : > { %v352_v37 = vpop.permute.xlu0 %351 }
  0x96   : > { %v1130_v45 = vpop.f32.mrf.mxu0 }
  0x97   : > { %v1132_v46 = vpop.f32.mrf.mxu1 }
  0x9c   : > { %v483_v47 = vpop.f32.mrf.mxu2 }
  0x9d   : > { %v545_v48 = vpop.f32.mrf.mxu3  ;;  %v484_v15 = vadd.f32 %v483_v47, %v362_v14 }
  0x9e   : > { %v1134_v49 = vpop.f32.mrf.mxu0  ;;  %v546_v38 = vadd.f32 %v545_v48, %v357_v36 }
  0x9f   : > { %v1136_v50 = vpop.f32.mrf.mxu1  ;;  %v585_v22 = vmax.f32 %v484_v15, 0.0 }
  0xa0   : > { %v584_v44 = vmax.f32 %v546_v38, 0.0 }
  0xa1   : > { %v617_v32 = vmin.f32 %v585_v22, 6.0 }
  0xa4   : > { %v486_v51 = vpop.f32.mrf.mxu2 }
  0xa5   : > { %v548_v52 = vpop.f32.mrf.mxu3  ;;  %v487_v6 = vadd.f32 %v486_v51, %v367_v4 }
  0xa6   : > { %v1138_v53 = vpop.f32.mrf.mxu0  ;;  %v549_v33 = vadd.f32 %v548_v52, %v362_v14  ;;  %v616_v52 = vmin.f32 %v584_v44, 6.0 }
  0xa7   : > { %v1140_v54 = vpop.f32.mrf.mxu1  ;;  %v587_v16 = vmax.f32 %v487_v6, 0.0 }
  0xa8   : > { %v586_v42 = vmax.f32 %v549_v33, 0.0 }
  0xa9   : > { %v619_v25 = vmin.f32 %v587_v16, 6.0 }
  0xaa   : > { %v618_v51 = vmin.f32 %v586_v42, 6.0 }
  0xac   : > { %v489_v55 = vpop.f32.mrf.mxu2 }
  0xad   : > { %v551_v56 = vpop.f32.mrf.mxu3  ;;  %v490_v3 = vadd.f32 %v489_v55, %v372_v60  ;;  %v347_v55 = vpop.permute.xlu1 %346 }
  0xae   : > { %v1142_v57 = vpop.f32.mrf.mxu0  ;;  %v552_v29 = vadd.f32 %v551_v56, %v367_v4  ;;  %v342_v56 = vpop.permute.xlu2 %341 }
  0xaf   : > { %v1144_v59 = vpop.f32.mrf.mxu1  ;;  %v589_v12 = vmax.f32 %v490_v3, 0.0 }
  0xb0   : > { %v588_v39 = vmax.f32 %v552_v29, 0.0 }
  0xb1   : > { %v621_v20 = vmin.f32 %v589_v12, 6.0 }
  0xb2   : > { %v620_v47 = vmin.f32 %v588_v39, 6.0 }
  0xb4   : > { %v492_v61 = vpop.f32.mrf.mxu2 }
  0xb5   : > { %v554_v62 = vpop.f32.mrf.mxu3  ;;  %v493_v2 = vadd.f32 %v492_v61, %v377_v1 }
  0xb6   : > { %v1146_v63 = vpop.f32.mrf.mxu0  ;;  %v555_v21 = vadd.f32 %v554_v62, %v372_v60  ;;  %v337_v60 = vpop.permute.xlu0 %336 }
  0xb7   : > { %v1148_v0 = vpop.f32.mrf.mxu1  ;;  %v591_v7 = vmax.f32 %v493_v2, 0.0 }
  0xb8   : > { %v590_v30 = vmax.f32 %v555_v21, 0.0 }
  0xb9   : > { %v623_v18 = vmin.f32 %v591_v7, 6.0 }
  0xba   : > { %v622_v40 = vmin.f32 %v590_v30, 6.0 }
  0xbc   : > { %v495_v5 = vpop.f32.mrf.mxu2 }
  0xbd   : > { %v496_v8 = vadd.f32 %v495_v5, %v382_v58  ;;  %v557_v9 = vpop.f32.mrf.mxu3  ;;  %v327_v5 = vpop.permute.xlu2 %326 }
  0xbe   : > { %v1150_v10 = vpop.f32.mrf.mxu0  ;;  %v558_v19 = vadd.f32 %v557_v9, %v377_v1  ;;  %v332_v1 = vpop.permute.xlu1 %331  ;;  %v528_v16 = vadd.f32 %v1148_v0, %v327_v5 }
  0xbf   : > { %v1152_v11 = vpop.f32.mrf.mxu1  ;;  %v593_v13 = vmax.f32 %v496_v8, 0.0  ;;  %v322_v6 = vpop.permute.xlu0 %321  ;;  %v466_v38 = vadd.f32 %v1150_v10, %v332_v1 }
  0xc0   : > { %v592_v26 = vmax.f32 %v558_v19, 0.0  ;;  %v531_v12 = vadd.f32 %v1152_v11, %v332_v1  ;;  %v525_v22 = vadd.f32 %v1144_v59, %v322_v6  ;;  %v572_v30 = vmax.f32 %v528_v16, 0.0  ;;  %v627_v1 = vld [vmem:[%s1208_s3] sm:$0xff] }
  0xc1   : > { %v625_v17 = vmin.f32 %v593_v13, 6.0 }
  0xc2   : > { %v624_v35 = vmin.f32 %v592_v26, 6.0  ;;  %v604_v42 = vmin.f32 %v572_v30, 6.0 }
  0xc3   : > { %655 = vmatpush.msrb.mxu2 %v625_v17 }
  0xc5   : > { %v560_v23 = vpop.f32.mrf.mxu3  ;;  %656 = vmatpush.msrb.mxu2 %v623_v18 }
  0xc6   : > { %v1154_v24 = vpop.f32.mrf.mxu0  ;;  %v561_v27 = vadd.f32 %v560_v23, %v382_v58  ;;  %v574_v23 = vmax.f32 %v531_v12, 0.0  ;;  %v317_v26 = vpop.permute.xlu1 %316  ;;  %v630_v12 = vld [vmem:[%s1208_s3 + $0x18] sm:$0xff] }
  0xc7   : > { %v533_v28 = vpop.f32.mrf.mxu1  ;;  %657 = vmatpush.msrb.mxu2 %v621_v20  ;;  %v522_v29 = vadd.f32 %v1140_v54, %v317_v26  ;;  %v469_v33 = vadd.f32 %v1154_v24, %v337_v60 }
  0xc8   : > { %v594_v31 = vmax.f32 %v561_v27, 0.0  ;;  %v534_v7 = vadd.f32 %v533_v28, %v337_v60 }
  0xc9   : > { %658 = vmatpush.msrb.mxu2 %v619_v25  ;;  %v568_v54 = vmax.f32 %v522_v29, 0.0  ;;  %v575_v24 = vmax.f32 %v469_v33, 0.0 }
  0xca   : > { %v626_v34 = vmin.f32 %v594_v31, 6.0  ;;  %v576_v17 = vmax.f32 %v534_v7, 0.0  ;;  %v312_v31 = vpop.permute.xlu2 %311 }
  0xcb   : > { %659 = vmatpush.msrb.mxu2 %v617_v32  ;;  %v307_v32 = vpop.permute.xlu0 %306  ;;  %v519_v59 = vadd.f32 %v1136_v50, %v312_v31  ;;  %v607_v60 = vmin.f32 %v575_v24, 6.0 }
  0xcc   : > { %684 = vmatpush.msrb.mxu3 %v626_v34  ;;  %v608_v0 = vmin.f32 %v576_v17, 6.0 }
  0xce   : > { %v471_v41 = vpop.f32.mrf.mxu0  ;;  %685 = vmatpush.msrb.mxu3 %v624_v35 }
  0xcf   : > { %v536_v43 = vpop.f32.mrf.mxu1  ;;  %v472_v27 = vadd.f32 %v471_v41, %v342_v56  ;;  %v516_v41 = vadd.f32 %v1132_v46, %v307_v32  ;;  %v457_v46 = vadd.f32 %v1138_v53, %v317_v26 }
  0xd0   : > { %686 = vmatpush.msrb.mxu3 %v622_v40  ;;  %v537_v3 = vadd.f32 %v536_v43, %v342_v56  ;;  %v463_v43 = vadd.f32 %v1146_v63, %v327_v5 }
  0xd1   : > { %v577_v39 = vmax.f32 %v472_v27, 0.0  ;;  %v564_v56 = vmax.f32 %v516_v41, 0.0 }
  0xd2   : > { %687 = vmatpush.msrb.mxu3 %v620_v47  ;;  %v578_v13 = vmax.f32 %v537_v3, 0.0  ;;  %v566_v47 = vmax.f32 %v519_v59, 0.0  ;;  %v451_v3 = vadd.f32 %v1130_v45, %v307_v32  ;;  %v629_v45 = vld [vmem:[%s1208_s3 + $0x10] sm:$0xff] }
  0xd3   : > { %v609_v10 = vmin.f32 %v577_v39, 6.0 }
  0xd4   : > { %688 = vmatpush.msrb.mxu3 %v618_v51  ;;  %v610_v25 = vmin.f32 %v578_v13, 6.0  ;;  %v460_v51 = vadd.f32 %v1142_v57, %v322_v6  ;;  %v598_v63 = vmin.f32 %v566_v47, 6.0  ;;  %v596_v57 = vmin.f32 %v564_v56, 6.0  ;;  %v638_v13 = vpop.permute.xlu1 %637 }
  0xd5   : > { %v563_v6 = vmax.f32 %v451_v3, 0.0 }
  0xd6   : > { %v474_v58 = vpop.f32.mrf.mxu0  ;;  %689 = vmatpush.msrb.mxu3 %v616_v52  ;;  %v600_v52 = vmin.f32 %v568_v54, 6.0 }
  0xd7   : > { %v539_v48 = vpop.f32.mrf.mxu1  ;;  %v475_v20 = vadd.f32 %v474_v58, %v347_v55  ;;  %v571_v58 = vmax.f32 %v463_v43, 0.0 }
  0xd8   : > { %v540_v61 = vadd.f32 %v539_v48, %v347_v55  ;;  %v573_v55 = vmax.f32 %v466_v38, 0.0  ;;  %v454_v48 = vadd.f32 %v1134_v49, %v312_v31 }
  0xd9   : > { %v579_v34 = vmax.f32 %v475_v20, 0.0  ;;  %v603_v53 = vmin.f32 %v571_v58, 6.0 }
  0xda   : > { %v580_v8 = vmax.f32 %v540_v61, 0.0  ;;  %v569_v61 = vmax.f32 %v460_v51, 0.0 }
  0xdb   : > { %v611_v44 = vmin.f32 %v579_v34, 6.0 }
  0xdc   : > { %v612_v19 = vmin.f32 %v580_v8, 6.0  ;;  %v601_v5 = vmin.f32 %v569_v61, 6.0  ;;  %v628_v8 = vld [vmem:[%s1208_s3 + $0x8] sm:$0xff] }
  0xde   : > { %v477_v62 = vpop.f32.mrf.mxu0 }
  0xdf   : > { %v542_v2 = vpop.f32.mrf.mxu1  ;;  %v478_v15 = vadd.f32 %v477_v62, %v352_v37  ;;  %v605_v62 = vmin.f32 %v573_v55, 6.0 }
  0xe0   : > { %v543_v4 = vadd.f32 %v542_v2, %v352_v37  ;;  %v606_v37 = vmin.f32 %v574_v23, 6.0  ;;  %v567_v2 = vmax.f32 %v457_v46, 0.0 }
  0xe1   : > { %v581_v28 = vmax.f32 %v478_v15, 0.0 }
  0xe2   : > { %v582_v9 = vmax.f32 %v543_v4, 0.0  ;;  %v565_v4 = vmax.f32 %v454_v48, 0.0  ;;  %v599_v49 = vmin.f32 %v567_v2, 6.0 }
  0xe3   : > { %v613_v40 = vmin.f32 %v581_v28, 6.0  ;;  %v648_v28 = vpop.permute.xlu0 %647 }
  0xe4   : > { %v614_v14 = vmin.f32 %v582_v9, 6.0  ;;  %v597_v7 = vmin.f32 %v565_v4, 6.0  ;;  %v595_v9 = vmin.f32 %v563_v6, 6.0 }
  0xe6   : > { %690 = vmatpush.msrb.mxu3 %v614_v14  ;;  %v480_v18 = vpop.f32.mrf.mxu0 }
  0xe7   : > { %v481_v21 = vadd.f32 %v480_v18, %v357_v36  ;;  %v570_v36 = vmax.f32 %v525_v22, 0.0  ;;  %v643_v18 = vpop.permute.xlu2 %642 }
  0xe8   : > { %691 = vmatpush.msrb.mxu3 %v612_v19 }
  0xe9   : > { %v583_v11 = vmax.f32 %v481_v21, 0.0  ;;  %v602_v50 = vmin.f32 %v570_v36, 6.0 }
  0xea   : > { %692 = vmatpush.msrb.mxu3 %v610_v25 }
  0xeb   : > { %v615_v35 = vmin.f32 %v583_v11, 6.0 }
  0xec   : > { %693 = vmatpush.msrb.mxu3 %v608_v0 }
  0xed   : > { %660 = vmatpush.msrb.mxu2 %v615_v35  ;;  %v653_v35 = vpop.permute.xlu1 %652 }
  0xee   : > { %694 = vmatpush.msrb.mxu3 %v606_v37 }
  0xef   : > { %661 = vmatpush.msrb.mxu2 %v613_v40 }
  0xf0   : > { %695 = vmatpush.msrb.mxu3 %v604_v42 }
  0xf1   : > { %662 = vmatpush.msrb.mxu2 %v611_v44 }
  0xf2   : > { %696 = vmatpush.msrb.mxu3 %v602_v50 }
  0xf3   : > { %663 = vmatpush.msrb.mxu2 %v609_v10 }
  0xf4   : > { %697 = vmatpush.msrb.mxu3 %v600_v52 }
  0xf5   : > { %664 = vmatpush.msrb.mxu2 %v607_v60 }
  0xf6   : > { %698 = vmatpush.msrb.mxu3 %v598_v63 }
  0xf7   : > { %665 = vmatpush.msrb.mxu2 %v605_v62 }
  0xf8   : > { %699 = vmatpush.msrb.mxu3 %v596_v57 }
  0xf9   : > { %700 = vmatmul.f32.vlgmr.msrb.gmra.mxu3 %v627_v1  ;;  %666 = vmatpush.msrb.mxu2 %v603_v53 }
  0xfb   : > { %667 = vmatpush.msrb.mxu2 %v601_v5 }
  0xfd   : > { %668 = vmatpush.msrb.mxu2 %v599_v49 }
  0xff   : > { %669 = vmatpush.msrb.mxu2 %v597_v7 }
 0x101   : > { %703 = vmatmul.f32.gmra.mxu3 %v628_v8  ;;  %670 = vmatpush.msrb.mxu2 %v595_v9 }
 0x102   : > { %671 = vmatmul.f32.vlgmr.msrb.gmra.mxu2 %v627_v1 }
 0x109   : > { %706 = vmatmul.f32.gmra.mxu3 %v629_v45 }
 0x10a   : > { %674 = vmatmul.f32.gmra.mxu2 %v628_v8 }
 0x111   : > { %709 = vmatmul.f32.gmra.mxu3 %v630_v12 }
 0x112   : > { %677 = vmatmul.f32.gmra.mxu2 %v629_v45 }
 0x11a   : > { %680 = vmatmul.f32.gmra.mxu2 %v630_v12 }
 0x17c   : > { %v701_v14 = vpop.f32.mrf.mxu3 }
 0x17d   : > { %v702_v15 = vadd.f32 %v701_v14, %v638_v13 }
 0x17f   : > { %v714_v16 = vmax.f32 %v702_v15, 0.0 }
 0x181   : > { %v722_v17 = vmin.f32 %v714_v16, 6.0 }
 0x183   : > { %730 = vst [vmem:[%s1186_s27 + $0x8] sm:$0xff] %v722_v17 }
 0x184   : > { %v704_v19 = vpop.f32.mrf.mxu3 }
 0x185   : > { %v705_v20 = vadd.f32 %v704_v19, %v643_v18  ;;  %v672_v21 = vpop.f32.mrf.mxu2 }
 0x186   : > { %v673_v22 = vadd.f32 %v672_v21, %v638_v13 }
 0x187   : > { %v716_v23 = vmax.f32 %v705_v20, 0.0 }
 0x188   : > { %v713_v25 = vmax.f32 %v673_v22, 0.0 }
 0x189   : > { %v724_v26 = vmin.f32 %v716_v23, 6.0 }
 0x18a   : > { %v721_v27 = vmin.f32 %v713_v25, 6.0 }
 0x18b   : > { %732 = vst [vmem:[%s1186_s27 + $0x18] sm:$0xff] %v724_v26 }
 0x18c   : > { %729 = vst [vmem:[%s1186_s27] sm:$0xff] %v721_v27  ;;  %v707_v11 = vpop.f32.mrf.mxu3 }
 0x18d   : > { %v708_v29 = vadd.f32 %v707_v11, %v648_v28  ;;  %v675_v30 = vpop.f32.mrf.mxu2 }
 0x18e   : > { %v676_v0 = vadd.f32 %v675_v30, %v643_v18 }
 0x18f   : > { %v718_v31 = vmax.f32 %v708_v29, 0.0 }
 0x190   : > { %v715_v32 = vmax.f32 %v676_v0, 0.0 }
 0x191   : > { %v726_v33 = vmin.f32 %v718_v31, 6.0 }
 0x192   : > { %v723_v34 = vmin.f32 %v715_v32, 6.0 }
 0x193   : > { %734 = vst [vmem:[%s1186_s27 + $0x28] sm:$0xff] %v726_v33 }
 0x194   : > { %731 = vst [vmem:[%s1186_s27 + $0x10] sm:$0xff] %v723_v34  ;;  %v710_v59 = vpop.f32.mrf.mxu3 }
 0x195   : > { %v711_v36 = vadd.f32 %v710_v59, %v653_v35  ;;  %v678_v37 = vpop.f32.mrf.mxu2 }
 0x196   : > { %v679_v38 = vadd.f32 %v678_v37, %v648_v28 }
 0x197   : > { %v720_v39 = vmax.f32 %v711_v36, 0.0 }
 0x198   : > { %v717_v40 = vmax.f32 %v679_v38, 0.0 }
 0x199   : > { %v728_v54 = vmin.f32 %v720_v39, 6.0 }
 0x19a   : > { %v725_v41 = vmin.f32 %v717_v40, 6.0 }
 0x19b   : > { %736 = vst [vmem:[%s1186_s27 + $0x38] sm:$0xff] %v728_v54 }
 0x19c   : > { %733 = vst [vmem:[%s1186_s27 + $0x20] sm:$0xff] %v725_v41 }
 0x19d   : > { %v681_v42 = vpop.f32.mrf.mxu2 }
 0x19e   : > { %v682_v43 = vadd.f32 %v681_v42, %v653_v35 }
 0x1a0   : > { %v719_v24 = vmax.f32 %v682_v43, 0.0 }
 0x1a2   : > { %v727_v44 = vmin.f32 %v719_v24, 6.0 }
 0x1a4   : > { %735 = vst [vmem:[%s1186_s27 + $0x30] sm:$0xff] %v727_v44 }
 0x1a5 PF: > { %s15_s20 = sadd.s32 1, %s927_s20   ;;  %s1211_s18 = smov %s923_s19 }
 0x1a6   : > { %p12_p5 = scmp.ge.s32.totalorder %s15_s20, 4   ;;  %s1212_s19 = smov %s1214_s21 }
 0x1a8   :  { %14 = sbr.rel (!%p12_p5) target bundleno = 2 (0x2), region = 70 }

</bundles_post_ra>
